<compile_context>
chip_gen: v7x
topology: tpu7x:2x2x1
jax: 0.10.0
libtpu: 0.0.40
codegen_flags: <defaults>
</compile_context>

<pallas_src>
import functools

import jax
import jax.numpy as jnp
from jax import lax
from jax.experimental import pallas as pl
from jax.experimental.pallas import tpu as pltpu


def _tcomplex_query_kernel(lhs_ref, rel_ref, time_ref, rhs_ref,
                           q_ref, reg_lhs_ref, reg_rel_ref, reg_rhs_ref,
                           *, rank: int):
    """Complex rotation + regularizer factors (tiny, runs once)."""
    R = rank
    lhs = lhs_ref[...]
    rel = rel_ref[...]
    tim = time_ref[...]
    rhs = rhs_ref[...]

    l0, l1 = lhs[:, :R], lhs[:, R:]
    r0, r1 = rel[:, :R], rel[:, R:]
    t0, t1 = tim[:, :R], tim[:, R:]
    h0, h1 = rhs[:, :R], rhs[:, R:]

    # full_rel = rel * time  (complex product)
    fr0 = r0 * t0 - r1 * t1
    fr1 = r1 * t0 + r0 * t1

    # query = lhs * full_rel (complex product), fused [re | im] layout
    q0 = l0 * fr0 - l1 * fr1
    q1 = l1 * fr0 + l0 * fr1
    q_ref[...] = jnp.concatenate([q0, q1], axis=-1).astype(q_ref.dtype)

    reg_lhs_ref[...] = jnp.sqrt(l0 * l0 + l1 * l1)
    reg_rel_ref[...] = jnp.sqrt(fr0 * fr0 + fr1 * fr1)
    reg_rhs_ref[...] = jnp.sqrt(h0 * h0 + h1 * h1)


def _tcomplex_score_kernel(q_ref, right_ref, scores_ref):
    """Hot loop: one fused K=2R matmul per entity tile (lane-dense output)."""
    scores_ref[...] = lax.dot_general(
        q_ref[...], right_ref[...],
        dimension_numbers=(((1,), (0,)), ((), ())),
        preferred_element_type=jnp.float32,
    ).astype(scores_ref.dtype)


def tcomplex_forward(x, ent_w, rel_w, time_w, rank, *, no_time_emb=False,
                     tn=512, right_dtype=jnp.bfloat16):
    """Pallas implementation of TComplEx.forward.

    x:      (B, 4) int32 quadruples (lhs, rel, rhs, timestamp)
    ent_w:  (n_entities, 2*rank) float32
    rel_w:  (n_relations, 2*rank) float32
    time_w: (n_timestamps, 2*rank) float32
    Returns (scores, (reg_lhs, reg_rel, reg_rhs), time_weight) matching PyTorch.
    """
    B = x.shape[0]
    N, two_r = ent_w.shape
    assert two_r == 2 * rank
    assert two_r % 128 == 0, "2*rank must be a multiple of 128 (lane axis)"
    tn = min(tn, N)
    assert tn % 128 == 0 and N % tn == 0, "entity tile must divide N and be 128-aligned"

    # Embedding gathers (glue, outside the kernels).
    lhs = ent_w[x[:, 0]]
    rel = rel_w[x[:, 1]]
    rhs = ent_w[x[:, 2]]
    tim = time_w[x[:, 3]]

    # --- Kernel 1: query prep + regularizers (single grid step) ---------------
    full_spec = pl.BlockSpec((B, two_r), lambda i: (0, 0))
    reg_spec = pl.BlockSpec((B, rank), lambda i: (0, 0))
    q_full, reg_lhs, reg_rel, reg_rhs = pl.pallas_call(
        functools.partial(_tcomplex_query_kernel, rank=rank),
        out_shape=(
            jax.ShapeDtypeStruct((B, two_r), right_dtype),   # fused query [re|im]
            jax.ShapeDtypeStruct((B, rank), jnp.float32),    # sqrt(lhs_re^2 + lhs_im^2)
            jax.ShapeDtypeStruct((B, rank), jnp.float32),    # sqrt(full_rel_re^2 + ...)
            jax.ShapeDtypeStruct((B, rank), jnp.float32),    # sqrt(rhs_re^2 + rhs_im^2)
        ),
        grid=(1,),
        in_specs=[full_spec, full_spec, full_spec, full_spec],
        out_specs=(full_spec, reg_spec, reg_spec, reg_spec),
    )(lhs, rel, tim, rhs)

    # --- Kernel 2: stream the entity table, fused matmul per tile -------------
    # One-time transpose + cast: K=2R on sublanes of the streamed tile, entity
    # axis on lanes -> lane-dense DMA and lane-dense scores writeback.
    right_t = ent_w.T.astype(right_dtype)

    elt = jnp.dtype(right_dtype).itemsize
    cost = pl.CostEstimate(
        flops=2 * B * two_r * N,
        transcendentals=0,
        bytes_accessed=N * two_r * elt + B * N * 4 + B * two_r * elt,
    )

    scores = pl.pallas_call(
        _tcomplex_score_kernel,
        out_shape=jax.ShapeDtypeStruct((B, N), jnp.float32),
        grid_spec=pltpu.PrefetchScalarGridSpec(
            num_scalar_prefetch=0,
            grid=(N // tn,),
            in_specs=[
                pl.BlockSpec((B, two_r), lambda j: (0, 0)),          # resident query
                pl.BlockSpec((two_r, tn), lambda j: (0, j),          # streamed entity tile
                             pipeline_mode=pl.Buffered(3)),
            ],
            out_specs=pl.BlockSpec((B, tn), lambda j: (0, j)),       # scores tile
        ),
        compiler_params=pltpu.CompilerParams(
            dimension_semantics=("parallel",)),                      # v7x: both TCs
        cost_estimate=cost,
    )(q_full, right_t)

    time_out = time_w[:-1] if no_time_emb else time_w
    return scores, (reg_lhs, reg_rel, reg_rhs), time_out


def tcomplex_forward_ref(x, ent_w, rel_w, time_w, rank, *, no_time_emb=False,
                         right_dtype=None):
    """Pure-JAX reference mirroring the PyTorch forward.

    If right_dtype is given, the query/entity-table are cast to that dtype
    before the matmul (to mirror the kernel's bf16 streaming path exactly).
    """
    lhs = ent_w[x[:, 0]]
    rel = rel_w[x[:, 1]]
    rhs = ent_w[x[:, 2]]
    tim = time_w[x[:, 3]]
    l0, l1 = lhs[:, :rank], lhs[:, rank:]
    r0, r1 = rel[:, :rank], rel[:, rank:]
    t0, t1 = tim[:, :rank], tim[:, rank:]
    h0, h1 = rhs[:, :rank], rhs[:, rank:]
    fr0 = r0 * t0 - r1 * t1
    fr1 = r1 * t0 + r0 * t1
    q = jnp.concatenate([l0 * fr0 - l1 * fr1, l1 * fr0 + l0 * fr1], axis=-1)
    right = ent_w
    if right_dtype is not None:
        q = q.astype(right_dtype)
        right = right.astype(right_dtype)
    scores = jnp.dot(q, right.T, preferred_element_type=jnp.float32)
    regs = (jnp.sqrt(l0 ** 2 + l1 ** 2),
            jnp.sqrt(fr0 ** 2 + fr1 ** 2),
            jnp.sqrt(h0 ** 2 + h1 ** 2))
    return scores, regs, (time_w[:-1] if no_time_emb else time_w)


if __name__ == "__main__":
    # Small, TPU-friendly sizes: sizes = (n_ent, n_rel, n_ent, n_ts), rank.
    n_ent, n_rel, n_ts = 2048, 32, 16
    rank = 128
    batch = 8
    init_size = 0.01

    key = jax.random.PRNGKey(0)
    k_ent, k_rel, k_ts, k_q = jax.random.split(key, 4)

    # nn.Embedding default init is N(0,1); module scales by init_size.
    ent_w = jax.random.normal(k_ent, (n_ent, 2 * rank), jnp.float32) * init_size
    rel_w = jax.random.normal(k_rel, (n_rel, 2 * rank), jnp.float32) * init_size
    time_w = jax.random.normal(k_ts, (n_ts, 2 * rank), jnp.float32) * init_size

    # Query quadruples (lhs, rel, rhs, timestamp).
    lhs_idx = jax.random.randint(k_q, (batch,), 0, n_ent)
    rel_idx = jax.random.randint(jax.random.fold_in(k_q, 1), (batch,), 0, n_rel)
    rhs_idx = jax.random.randint(jax.random.fold_in(k_q, 2), (batch,), 0, n_ent)
    ts_idx = jax.random.randint(jax.random.fold_in(k_q, 3), (batch,), 0, n_ts)
    x = jnp.stack([lhs_idx, rel_idx, rhs_idx, ts_idx], axis=1).astype(jnp.int32)

    scores, regs, t_out = tcomplex_forward(x, ent_w, rel_w, time_w, rank,
                                           tn=512, right_dtype=jnp.bfloat16)
    jax.block_until_ready(scores)
    jax.block_until_ready(regs)

    # Bit-for-bit-comparable reference (same bf16 streaming of the table).
    scores_bf, regs_r, t_out_r = tcomplex_forward_ref(
        x, ent_w, rel_w, time_w, rank, right_dtype=jnp.bfloat16)
    assert jnp.allclose(scores, scores_bf, atol=1e-9, rtol=1e-3)

    # Coarse check against the original full-f32 semantics (bf16 table stream
    # is an intentional precision trade; tolerance relaxed accordingly).
    scores_f32, _, _ = tcomplex_forward_ref(x, ent_w, rel_w, time_w, rank)
    assert jnp.allclose(scores, scores_f32, atol=2e-8, rtol=5e-2)

    # Regularizer factors are computed in full f32 -> tight tolerance.
    for a, b in zip(regs, regs_r):
        assert jnp.allclose(a, b, atol=1e-6, rtol=1e-5)
    assert jnp.array_equal(t_out, t_out_r)

    print("KERNEL_OK")
</pallas_src>

<mosaic_0001>
module attributes {stable_mosaic.version = 11 : i64} {
  func.func @_tcomplex_query_kernel(%arg0: i32, %arg1: memref<8x256xf32, #tpu.memory_space<vmem>>, %arg2: memref<8x256xf32, #tpu.memory_space<vmem>>, %arg3: memref<8x256xf32, #tpu.memory_space<vmem>>, %arg4: memref<8x256xf32, #tpu.memory_space<vmem>>, %arg5: memref<8x256xbf16, #tpu.memory_space<vmem>>, %arg6: memref<8x128xf32, #tpu.memory_space<vmem>>, %arg7: memref<8x128xf32, #tpu.memory_space<vmem>>, %arg8: memref<8x128xf32, #tpu.memory_space<vmem>>) attributes {dimension_semantics = [#tpu.dimension_semantics<arbitrary>], iteration_bounds = array<i64: 1>, scalar_prefetch = 0 : i64, scratch_operands = 0 : i64, tpu.core_type = #tpu.core_type<tc>, window_params = [{pipeline_mode = #tpu.pipeline_mode<synchronous>, transform_indices = @transform_0, window_bounds = array<i64: 8, 256>}, {pipeline_mode = #tpu.pipeline_mode<synchronous>, transform_indices = @transform_1, window_bounds = array<i64: 8, 256>}, {pipeline_mode = #tpu.pipeline_mode<synchronous>, transform_indices = @transform_2, window_bounds = array<i64: 8, 256>}, {pipeline_mode = #tpu.pipeline_mode<synchronous>, transform_indices = @transform_3, window_bounds = array<i64: 8, 256>}, {pipeline_mode = #tpu.pipeline_mode<synchronous>, transform_indices = @transform_4, window_bounds = array<i64: 8, 256>}, {pipeline_mode = #tpu.pipeline_mode<synchronous>, transform_indices = @transform_5, window_bounds = array<i64: 8, 128>}, {pipeline_mode = #tpu.pipeline_mode<synchronous>, transform_indices = @transform_6, window_bounds = array<i64: 8, 128>}, {pipeline_mode = #tpu.pipeline_mode<synchronous>, transform_indices = @transform_7, window_bounds = array<i64: 8, 128>}]} {
    %c0 = arith.constant 0 : index
    %c0_0 = arith.constant 0 : index
    %0 = vector.load %arg1[%c0, %c0_0] : memref<8x256xf32, #tpu.memory_space<vmem>>, vector<8x256xf32>
    %c0_1 = arith.constant 0 : index
    %c0_2 = arith.constant 0 : index
    %1 = vector.load %arg2[%c0_1, %c0_2] : memref<8x256xf32, #tpu.memory_space<vmem>>, vector<8x256xf32>
    %c0_3 = arith.constant 0 : index
    %c0_4 = arith.constant 0 : index
    %2 = vector.load %arg3[%c0_3, %c0_4] : memref<8x256xf32, #tpu.memory_space<vmem>>, vector<8x256xf32>
    %c0_5 = arith.constant 0 : index
    %c0_6 = arith.constant 0 : index
    %3 = vector.load %arg4[%c0_5, %c0_6] : memref<8x256xf32, #tpu.memory_space<vmem>>, vector<8x256xf32>
    %4 = vector.extract_strided_slice %0 {offsets = [0, 0], sizes = [8, 128], strides = [1, 1]} : vector<8x256xf32> to vector<8x128xf32>
    %5 = vector.extract_strided_slice %0 {offsets = [0, 128], sizes = [8, 128], strides = [1, 1]} : vector<8x256xf32> to vector<8x128xf32>
    %6 = vector.extract_strided_slice %1 {offsets = [0, 0], sizes = [8, 128], strides = [1, 1]} : vector<8x256xf32> to vector<8x128xf32>
    %7 = vector.extract_strided_slice %1 {offsets = [0, 128], sizes = [8, 128], strides = [1, 1]} : vector<8x256xf32> to vector<8x128xf32>
    %8 = vector.extract_strided_slice %2 {offsets = [0, 0], sizes = [8, 128], strides = [1, 1]} : vector<8x256xf32> to vector<8x128xf32>
    %9 = vector.extract_strided_slice %2 {offsets = [0, 128], sizes = [8, 128], strides = [1, 1]} : vector<8x256xf32> to vector<8x128xf32>
    %10 = vector.extract_strided_slice %3 {offsets = [0, 0], sizes = [8, 128], strides = [1, 1]} : vector<8x256xf32> to vector<8x128xf32>
    %11 = vector.extract_strided_slice %3 {offsets = [0, 128], sizes = [8, 128], strides = [1, 1]} : vector<8x256xf32> to vector<8x128xf32>
    %12 = arith.mulf %6, %8 : vector<8x128xf32>
    %13 = arith.mulf %7, %9 : vector<8x128xf32>
    %14 = arith.subf %12, %13 : vector<8x128xf32>
    %15 = arith.mulf %7, %8 : vector<8x128xf32>
    %16 = arith.mulf %6, %9 : vector<8x128xf32>
    %17 = arith.addf %15, %16 : vector<8x128xf32>
    %18 = arith.mulf %4, %14 : vector<8x128xf32>
    %19 = arith.mulf %5, %17 : vector<8x128xf32>
    %20 = arith.subf %18, %19 : vector<8x128xf32>
    %21 = arith.mulf %5, %14 : vector<8x128xf32>
    %22 = arith.mulf %4, %17 : vector<8x128xf32>
    %23 = arith.addf %21, %22 : vector<8x128xf32>
    %24 = tpu.concatenate %20, %23 in 1 : vector<8x128xf32>, vector<8x128xf32> -> vector<8x256xf32>
    %25 = arith.truncf %24 : vector<8x256xf32> to vector<8x256xbf16>
    %c0_7 = arith.constant 0 : index
    %c0_8 = arith.constant 0 : index
    %26 = vector.load %arg5[%c0_7, %c0_8] : memref<8x256xbf16, #tpu.memory_space<vmem>>, vector<8x256xbf16>
    tpu.vector_store %arg5[%c0_7, %c0_8], %25 {strides = array<i32>} : memref<8x256xbf16, #tpu.memory_space<vmem>>, vector<8x256xbf16>,
    %27 = arith.mulf %4, %4 : vector<8x128xf32>
    %28 = arith.mulf %5, %5 : vector<8x128xf32>
    %29 = arith.addf %27, %28 : vector<8x128xf32>
    %30 = math.sqrt %29 : vector<8x128xf32>
    %c0_9 = arith.constant 0 : index
    %c0_10 = arith.constant 0 : index
    %31 = vector.load %arg6[%c0_9, %c0_10] : memref<8x128xf32, #tpu.memory_space<vmem>>, vector<8x128xf32>
    tpu.vector_store %arg6[%c0_9, %c0_10], %30 {strides = array<i32>} : memref<8x128xf32, #tpu.memory_space<vmem>>, vector<8x128xf32>,
    %32 = arith.mulf %14, %14 : vector<8x128xf32>
    %33 = arith.mulf %17, %17 : vector<8x128xf32>
    %34 = arith.addf %32, %33 : vector<8x128xf32>
    %35 = math.sqrt %34 : vector<8x128xf32>
    %c0_11 = arith.constant 0 : index
    %c0_12 = arith.constant 0 : index
    %36 = vector.load %arg7[%c0_11, %c0_12] : memref<8x128xf32, #tpu.memory_space<vmem>>, vector<8x128xf32>
    tpu.vector_store %arg7[%c0_11, %c0_12], %35 {strides = array<i32>} : memref<8x128xf32, #tpu.memory_space<vmem>>, vector<8x128xf32>,
    %37 = arith.mulf %10, %10 : vector<8x128xf32>
    %38 = arith.mulf %11, %11 : vector<8x128xf32>
    %39 = arith.addf %37, %38 : vector<8x128xf32>
    %40 = math.sqrt %39 : vector<8x128xf32>
    %c0_13 = arith.constant 0 : index
    %c0_14 = arith.constant 0 : index
    %41 = vector.load %arg8[%c0_13, %c0_14] : memref<8x128xf32, #tpu.memory_space<vmem>>, vector<8x128xf32>
    tpu.vector_store %arg8[%c0_13, %c0_14], %40 {strides = array<i32>} : memref<8x128xf32, #tpu.memory_space<vmem>>, vector<8x128xf32>,
    return
  }
  func.func @transform_0(%arg0: i32) -> (i32, i32) {
    %c0_i32 = arith.constant 0 : i32
    %c0_i32_0 = arith.constant 0 : i32
    %c0_i32_1 = arith.constant 0 : i32
    return %c0_i32, %c0_i32_0 : i32, i32
  }
  func.func @transform_1(%arg0: i32) -> (i32, i32) {
    %c0_i32 = arith.constant 0 : i32
    %c0_i32_0 = arith.constant 0 : i32
    %c0_i32_1 = arith.constant 0 : i32
    return %c0_i32, %c0_i32_0 : i32, i32
  }
  func.func @transform_2(%arg0: i32) -> (i32, i32) {
    %c0_i32 = arith.constant 0 : i32
    %c0_i32_0 = arith.constant 0 : i32
    %c0_i32_1 = arith.constant 0 : i32
    return %c0_i32, %c0_i32_0 : i32, i32
  }
  func.func @transform_3(%arg0: i32) -> (i32, i32) {
    %c0_i32 = arith.constant 0 : i32
    %c0_i32_0 = arith.constant 0 : i32
    %c0_i32_1 = arith.constant 0 : i32
    return %c0_i32, %c0_i32_0 : i32, i32
  }
  func.func @transform_4(%arg0: i32) -> (i32, i32) {
    %c0_i32 = arith.constant 0 : i32
    %c0_i32_0 = arith.constant 0 : i32
    %c0_i32_1 = arith.constant 0 : i32
    return %c0_i32, %c0_i32_0 : i32, i32
  }
  func.func @transform_5(%arg0: i32) -> (i32, i32) {
    %c0_i32 = arith.constant 0 : i32
    %c0_i32_0 = arith.constant 0 : i32
    %c0_i32_1 = arith.constant 0 : i32
    return %c0_i32, %c0_i32_0 : i32, i32
  }
  func.func @transform_6(%arg0: i32) -> (i32, i32) {
    %c0_i32 = arith.constant 0 : i32
    %c0_i32_0 = arith.constant 0 : i32
    %c0_i32_1 = arith.constant 0 : i32
    return %c0_i32, %c0_i32_0 : i32, i32
  }
  func.func @transform_7(%arg0: i32) -> (i32, i32) {
    %c0_i32 = arith.constant 0 : i32
    %c0_i32_0 = arith.constant 0 : i32
    %c0_i32_1 = arith.constant 0 : i32
    return %c0_i32, %c0_i32_0 : i32, i32
  }
}

</mosaic_0001>

<bundles_post_ra>
// kernel: tpu_custom_call.1
= control target key start
LH: loop header
LB: loop body
LE: loop exit
PB: predicated region body
PF: predicated region fallthrough
CT: control target
= control target key end

     0   :  { %13 = vsyncpa [#allocation3], 0  ;;  %s561_s0 = inlined_call_operand.hbm [shape: f32[8,256], index: 0, kind: input, shape index: {}]   ;;  %s562_s1 = inlined_call_operand.hbm [shape: f32[8,256], index: 1, kind: input, shape index: {}]   ;;  %s563_s2 = inlined_call_operand.hbm [shape: f32[8,256], index: 2, kind: input, shape index: {}]   ;;  %s564_s3 = inlined_call_operand.hbm [shape: f32[8,256], index: 3, kind: input, shape index: {}]   ;;  %s565_s4 = inlined_call_operand.hbm [shape: bf16[8,256], index: 4, kind: output, shape index: {0}]   ;;  %s566_s5 = inlined_call_operand.hbm [shape: f32[8,128], index: 5, kind: output, shape index: {1}]   ;;  %s567_s6 = inlined_call_operand.hbm [shape: f32[8,128], index: 6, kind: output, shape index: {2}]   ;;  %s568_s7 = inlined_call_operand.hbm [shape: f32[8,128], index: 7, kind: output, shape index: {3}]  }
   0x1   :  { %14 = vsyncpa [#allocation6], 0 }
   0x2   :  { %15 = vsyncpa [#allocation9], 0 }
   0x3   :  { %16 = vsyncpa [#allocation4], 0 }
   0x4   :  { %17 = vsyncpa [#allocation12], 0 }
   0x5   :  { %18 = vsyncpa [#allocation15], 0  ;;  %s395_s24 = smov [#allocation5]   ;;  %s396_s26 = smov [#allocation2]  }
   0x6   :  { %s35_s25 = sshll.u32 %s395_s24, 4  ;;  %s25_s27 = sshll.u32 %s396_s26, 4  ;;  %s36_s25 = int_to_ptr.vmem [resolvable:$true] %s35_s25  ;;  %s26_s27 = int_to_ptr.vmem [resolvable:$true] %s25_s27 }
   0x7   :  { %s207_s30 = scalar_lea.hbm %s562_s1, 256 }
   0x8   :  { %p208_p0 = scmp.ne.s32.totalorder %s562_s1, %s207_s30  ;;  %p211_p1 = scmp.lt.u32.totalorder %s207_s30, %s562_s1 }
   0xa   :  { %p213_p2 = pnand %p211_p1, %p208_p0 }
   0xc   :  { %216 = shalt.err (!%p213_p2)
}
   0xd   :  { %s217_s12 = scalar_lea.vmem %s36_s25, 256  ;;  %p222_p4 = scmp.lt.s32.totalorder %s36_s25, %s36_s25 }
   0xe   :  { %p218_p3 = scmp.ne.s32.totalorder %s36_s25, %s217_s12  ;;  %p223_p5 = scmp.lt.s32.totalorder %s217_s12, %s217_s12 }
  0x10   :  { %p224_p6 = por %p223_p5, %p222_p4 }
  0x12   :  { %p225_p7 = pnand %p224_p6, %p218_p3 }
  0x14   :  { %228 = shalt.err (!%p225_p7)
}
  0x15   :  { %38 = dma.hbm_to_vmem [thread:$0]  %s562_s1, 256, %s36_s25, [#allocation6]  }
  0x16   :  { %s229_s17 = scalar_lea.hbm %s561_s0, 256 }
  0x17   :  { %p230_p8 = scmp.ne.s32.totalorder %s561_s0, %s229_s17  ;;  %p233_p9 = scmp.lt.u32.totalorder %s229_s17, %s561_s0 }
  0x19   :  { %p235_p10 = pnand %p233_p9, %p230_p8 }
  0x1b   :  { %238 = shalt.err (!%p235_p10)
}
  0x1c   :  { %s239_s22 = scalar_lea.vmem %s26_s27, 256  ;;  %p244_p12 = scmp.lt.s32.totalorder %s26_s27, %s26_s27 }
  0x1d   :  { %p240_p11 = scmp.ne.s32.totalorder %s26_s27, %s239_s22  ;;  %p245_p13 = scmp.lt.s32.totalorder %s239_s22, %s239_s22 }
  0x1f   :  { %p246_p0 = por %p245_p13, %p244_p12 }
  0x21   :  { %p247_p1 = pnand %p246_p0, %p240_p11 }
  0x23   :  { %250 = shalt.err (!%p247_p1)
}
  0x24   :  { %28 = dma.hbm_to_vmem [thread:$0]  %s561_s0, 256, %s26_s27, [#allocation3]  }
  0x25   :  { %s397_s24 = smov [#allocation7]   ;;  %s398_s26 = smov [#allocation8]  }
  0x26   :  { %s45_s25 = sshll.u32 %s397_s24, 4  ;;  %s55_s28 = sshll.u32 %s398_s26, 4  ;;  %s46_s25 = int_to_ptr.vmem [resolvable:$true] %s45_s25  ;;  %s56_s28 = int_to_ptr.vmem [resolvable:$true] %s55_s28 }
  0x27   :  { %s251_s8 = scalar_lea.hbm %s563_s2, 256 }
  0x28   :  { %p252_p2 = scmp.ne.s32.totalorder %s563_s2, %s251_s8  ;;  %p255_p3 = scmp.lt.u32.totalorder %s251_s8, %s563_s2 }
  0x2a   :  { %p257_p4 = pnand %p255_p3, %p252_p2 }
  0x2c   :  { %260 = shalt.err (!%p257_p4)
}
  0x2d   :  { %s261_s0 = scalar_lea.vmem %s46_s25, 256  ;;  %p266_p6 = scmp.lt.s32.totalorder %s46_s25, %s46_s25 }
  0x2e   :  { %p262_p5 = scmp.ne.s32.totalorder %s46_s25, %s261_s0  ;;  %p267_p7 = scmp.lt.s32.totalorder %s261_s0, %s261_s0 }
  0x30   :  { %p268_p8 = por %p267_p7, %p266_p6 }
  0x32   :  { %p269_p9 = pnand %p268_p8, %p262_p5 }
  0x34   :  { %272 = shalt.err (!%p269_p9)
}
  0x35   :  { %48 = dma.hbm_to_vmem [thread:$0]  %s563_s2, 256, %s46_s25, [#allocation6]  }
  0x36   :  { %s273_s16 = scalar_lea.hbm %s564_s3, 256 }
  0x37   :  { %p274_p10 = scmp.ne.s32.totalorder %s564_s3, %s273_s16  ;;  %p277_p11 = scmp.lt.u32.totalorder %s273_s16, %s564_s3 }
  0x39   :  { %p279_p12 = pnand %p277_p11, %p274_p10 }
  0x3b   :  { %282 = shalt.err (!%p279_p12)
}
  0x3c   :  { %s283_s21 = scalar_lea.vmem %s56_s28, 256  ;;  %p288_p0 = scmp.lt.s32.totalorder %s56_s28, %s56_s28 }
  0x3d   :  { %p284_p13 = scmp.ne.s32.totalorder %s56_s28, %s283_s21  ;;  %p289_p1 = scmp.lt.s32.totalorder %s283_s21, %s283_s21 }
  0x3f   :  { %p290_p2 = por %p289_p1, %p288_p0 }
  0x41   :  { %p291_p3 = pnand %p290_p2, %p284_p13 }
  0x43   :  { %294 = shalt.err (!%p291_p3)
}
  0x44   :  { %58 = dma.hbm_to_vmem [thread:$0]  %s564_s3, 256, %s56_s28, [#allocation9]  }
  0x45   :  { %383 = dma.done.wait [#allocation3], 256  }
  0x46   :  { %384 = vsyncadd [#allocation3], 4294967040 }
  0x47   :  { %385 = dma.done.wait [#allocation6], 512  }
  0x48   :  { %386 = vsyncadd [#allocation6], 4294966784 }
  0x49   :  { %387 = dma.done.wait [#allocation9], 256  }
  0x4a   :  { %388 = vsyncadd [#allocation9], 4294967040  ;;  %v71_v0 = vld [vmem:[#allocation2] sm:$0xff]  ;;  %v72_v1 = vld [vmem:[#allocation2 + $0x8] sm:$0xff]  ;;  %s399_s3 = smov [#allocation10]  }
  0x4b   :  { %v73_v2 = vld [vmem:[#allocation5] sm:$0xff]  ;;  %v100_v3 = vmul.f32 %v71_v0, %v71_v0  ;;  %v101_v4 = vmul.f32 %v72_v1, %v72_v1  ;;  %v74_v5 = vld [vmem:[#allocation5 + $0x8] sm:$0xff]  ;;  %v75_v6 = vld [vmem:[#allocation7] sm:$0xff]  ;;  %s139_s1 = sshll.u32 %s399_s3, 4  ;;  %s140_s1 = int_to_ptr.vmem [resolvable:$true] %s139_s1 }
  0x4c   :  { %v76_v7 = vld [vmem:[#allocation7 + $0x8] sm:$0xff]  ;;  %v79_v8 = vmul.f32 %v75_v6, %v73_v2  ;;  %v82_v10 = vmul.f32 %v75_v6, %v74_v5  ;;  %v77_v12 = vld [vmem:[#allocation8] sm:$0xff]  ;;  %v78_v13 = vld [vmem:[#allocation8 + $0x8] sm:$0xff]  ;;  %s295_s23 = scalar_lea.vmem %s140_s1, 128  ;;  %p300_p5 = scmp.lt.s32.totalorder %s140_s1, %s140_s1 }
  0x4d   :  { %v80_v9 = vmul.f32 %v76_v7, %v74_v5  ;;  %v83_v11 = vmul.f32 %v76_v7, %v73_v2  ;;  %v102_v14 = vadd.f32 %v101_v4, %v100_v3  ;;  %v122_v15 = vmul.f32 %v77_v12, %v77_v12  ;;  %p296_p4 = scmp.ne.s32.totalorder %s140_s1, %s295_s23  ;;  %p301_p6 = scmp.lt.s32.totalorder %s295_s23, %s295_s23 }
  0x4e   :  { %v123_v16 = vmul.f32 %v78_v13, %v78_v13 }
  0x4f   :  { %v81_v17 = vsub.f32 %v79_v8, %v80_v9  ;;  %v84_v18 = vadd.f32 %v83_v11, %v82_v10  ;;  %201 = vrsqrt.f32 %v102_v14  ;;  %p302_p7 = por %p301_p6, %p300_p5 }
  0x50   :  { %v491_v25 = vadd.f32 %v123_v16, %v122_v15 }
  0x51   :  { %v85_v19 = vmul.f32 %v81_v17, %v71_v0  ;;  %v86_v20 = vmul.f32 %v84_v18, %v72_v1  ;;  %v88_v21 = vmul.f32 %v81_v17, %v72_v1  ;;  %v89_v22 = vmul.f32 %v84_v18, %v71_v0  ;;  %p303_p8 = pnand %p302_p7, %p296_p4 }
  0x52   :  { %v111_v23 = vmul.f32 %v81_v17, %v81_v17  ;;  %v112_v24 = vmul.f32 %v84_v18, %v84_v18  ;;  %203 = vrsqrt.f32 %v491_v25 }
  0x53   :  { %v87_v26 = vsub.f32 %v85_v19, %v86_v20  ;;  %v90_v27 = vadd.f32 %v89_v22, %v88_v21 }
  0x54   :  { %v493_v28 = vadd.f32 %v112_v24, %v111_v23 }
  0x55   :  { %v192_v29 = vpack.c.bf16 %v90_v27, %v87_v26 }
  0x56   :  { %205 = vrsqrt.f32 %v493_v28 }
  0x57   :  { %99 = vst [vmem:[#allocation10] sm:$0xff] %v192_v29 }
  0x58   :  { %306 = shalt.err (!%p303_p8)
}
  0x59   :  { %s307_s26 = scalar_lea.hbm %s565_s4, 128 }
  0x5a   :  { %p308_p9 = scmp.ne.s32.totalorder %s565_s4, %s307_s26  ;;  %p311_p10 = scmp.lt.u32.totalorder %s307_s26, %s565_s4 }
  0x5c   :  { %p313_p11 = pnand %p311_p10, %p308_p9 }
  0x5e   :  { %316 = shalt.err (!%p313_p11)
}
  0x5f   :  { %142 = dma.vmem_to_hbm [thread:$0]  %s140_s1, 128, %s565_s4, [#allocation4]   ;;  %v202_v30 = vpop.eup %201  ;;  %vm105_vm0 = vcmp.eq.f32.partialorder %v102_v14, inf  ;;  %v108_v31 = vand.u32 2147483648, %v102_v14  ;;  %vm107_vm1 = vcmp.eq.f32.partialorder %v102_v14, 0.0  ;;  %vm127_vm2 = vcmp.eq.f32.partialorder %v491_v25, inf }
  0x60   :  { %s400_s11 = smov [#allocation11]   ;;  %v104_v32 = vmul.f32 %v202_v30, %v102_v14  ;;  %v204_v34 = vpop.eup %203  ;;  %v130_v36 = vand.u32 2147483648, %v491_v25  ;;  %s401_s0 = smov [#allocation14]   ;;  %vm129_vm3 = vcmp.eq.f32.partialorder %v491_v25, 0.0  ;;  %vm116_vm4 = vcmp.eq.f32.partialorder %v493_v28, inf }
  0x61   :  { %s149_s12 = sshll.u32 %s400_s11, 4  ;;  %s169_s27 = sshll.u32 %s401_s0, 4  ;;  %v126_v37 = vmul.f32 %v204_v34, %v491_v25  ;;  %v206_v38 = vpop.eup %205  ;;  %v119_v39 = vand.u32 2147483648, %v493_v28  ;;  %s150_s12 = int_to_ptr.vmem [resolvable:$true] %s149_s12  ;;  %s170_s27 = int_to_ptr.vmem [resolvable:$true] %s169_s27 }
  0x62   :  { %v106_v33 = vsel %vm105_vm0, %v102_v14, %v104_v32  ;;  %s402_s4 = smov [#allocation13]   ;;  %s317_s14 = scalar_lea.vmem %s150_s12, 128 }
  0x63   :  { %v109_v35 = vsel %vm107_vm1, %v108_v31, %v106_v33  ;;  %s159_s13 = sshll.u32 %s402_s4, 4  ;;  %p318_p12 = scmp.ne.s32.totalorder %s150_s12, %s317_s14  ;;  %s160_s13 = int_to_ptr.vmem [resolvable:$true] %s159_s13 }
  0x64   :  { %110 = vst [vmem:[#allocation11] sm:$0xff] %v109_v35  ;;  %p322_p13 = scmp.lt.s32.totalorder %s150_s12, %s150_s12  ;;  %p323_p0 = scmp.lt.s32.totalorder %s317_s14, %s317_s14 }
  0x66   :  { %p324_p1 = por %p323_p0, %p322_p13 }
  0x68   :  { %p325_p2 = pnand %p324_p1, %p318_p12 }
  0x6a   :  { %328 = shalt.err (!%p325_p2)
}
  0x6b   :  { %s329_s17 = scalar_lea.hbm %s566_s5, 128 }
  0x6c   :  { %p330_p3 = scmp.ne.s32.totalorder %s566_s5, %s329_s17  ;;  %p333_p4 = scmp.lt.u32.totalorder %s329_s17, %s566_s5 }
  0x6e   :  { %p335_p5 = pnand %p333_p4, %p330_p3 }
  0x70   :  { %338 = shalt.err (!%p335_p5)
}
  0x71   :  { %152 = dma.vmem_to_hbm [thread:$0]  %s150_s12, 128, %s566_s5, [#allocation12]   ;;  %v115_v40 = vmul.f32 %v206_v38, %v493_v28  ;;  %vm118_vm5 = vcmp.eq.f32.partialorder %v493_v28, 0.0  ;;  %v128_v41 = vsel %vm127_vm2, %v491_v25, %v126_v37 }
  0x72   :  { %v131_v42 = vsel %vm129_vm3, %v130_v36, %v128_v41  ;;  %s339_s5 = scalar_lea.vmem %s170_s27, 128  ;;  %p344_p7 = scmp.lt.s32.totalorder %s170_s27, %s170_s27 }
  0x73   :  { %v117_v43 = vsel %vm116_vm4, %v493_v28, %v115_v40  ;;  %132 = vst [vmem:[#allocation14] sm:$0xff] %v131_v42  ;;  %p340_p6 = scmp.ne.s32.totalorder %s170_s27, %s339_s5  ;;  %p345_p8 = scmp.lt.s32.totalorder %s339_s5, %s339_s5 }
  0x74   :  { %v120_v44 = vsel %vm118_vm5, %v119_v39, %v117_v43 }
  0x75   :  { %p346_p9 = por %p345_p8, %p344_p7 }
  0x77   :  { %p347_p10 = pnand %p346_p9, %p340_p6 }
  0x79   :  { %350 = shalt.err (!%p347_p10)
}
  0x7a   :  { %s351_s23 = scalar_lea.hbm %s568_s7, 128 }
  0x7b   :  { %p352_p11 = scmp.ne.s32.totalorder %s568_s7, %s351_s23  ;;  %p355_p12 = scmp.lt.u32.totalorder %s351_s23, %s568_s7 }
  0x7d   :  { %p357_p13 = pnand %p355_p12, %p352_p11 }
  0x7f   :  { %360 = shalt.err (!%p357_p13)
}
  0x80   :  { %172 = dma.vmem_to_hbm [thread:$0]  %s170_s27, 128, %s568_s7, [#allocation15]   ;;  %121 = vst [vmem:[#allocation13] sm:$0xff] %v120_v44 }
  0x81   :  { %s361_s8 = scalar_lea.vmem %s160_s13, 128  ;;  %p366_p1 = scmp.lt.s32.totalorder %s160_s13, %s160_s13 }
  0x82   :  { %p362_p0 = scmp.ne.s32.totalorder %s160_s13, %s361_s8  ;;  %p367_p2 = scmp.lt.s32.totalorder %s361_s8, %s361_s8 }
  0x84   :  { %p368_p3 = por %p367_p2, %p366_p1 }
  0x86   :  { %p369_p4 = pnand %p368_p3, %p362_p0 }
  0x88   :  { %372 = shalt.err (!%p369_p4)
}
  0x89   :  { %s373_s11 = scalar_lea.hbm %s567_s6, 128 }
  0x8a   :  { %p374_p5 = scmp.ne.s32.totalorder %s567_s6, %s373_s11  ;;  %p377_p6 = scmp.lt.u32.totalorder %s373_s11, %s567_s6 }
  0x8c   :  { %p379_p7 = pnand %p377_p6, %p374_p5 }
  0x8e   :  { %382 = shalt.err (!%p379_p7)
}
  0x8f   :  { %162 = dma.vmem_to_hbm [thread:$0]  %s160_s13, 128, %s567_s6, [#allocation12]  }
  0x90   :  { %389 = dma.done.wait [#allocation4], 128  }
  0x91   :  { %390 = vsyncadd [#allocation4], 4294967168 }
  0x92   :  { %391 = dma.done.wait [#allocation12], 256  }
  0x93   :  { %392 = vsyncadd [#allocation12], 4294967040 }
  0x94   :  { %393 = dma.done.wait [#allocation15], 128  }
  0x95   :  { %394 = vsyncadd [#allocation15], 4294967168 }
  0x96   :  { %185 = vsyncpa [#allocation3], 1 }
  0x97   :  { %186 = vsyncpa [#allocation6], 1 }
  0x98   :  { %187 = vsyncpa [#allocation9], 1 }
  0x99   :  { %188 = vsyncpa [#allocation4], 1 }
  0x9a   :  { %189 = vsyncpa [#allocation12], 1 }
  0x9b   :  { %190 = vsyncpa [#allocation15], 1 }

</bundles_post_ra>
